<compile_context>
chip_gen: v6e
topology: v6e:2x2x1
jax: 0.10.0
libtpu: 0.0.40
codegen_flags: <defaults>
</compile_context>

<pallas_src>
import jax
import jax.numpy as jnp
import numpy as np
from jax.experimental import pallas as pl
from jax.experimental.pallas import tpu as pltpu

LANE = 128      # lane width (last dim granularity)
SUBLANE = 8     # sublane width (second-to-last dim granularity)


def _round_up(n, m):
    return ((n + m - 1) // m) * m


def _pad_to(a, shape):
    pads = [(0, s - d) for d, s in zip(a.shape, shape)]
    if all(p == (0, 0) for p in pads):
        return a
    return jnp.pad(a, pads)


def mlp_kernel(x_ref, w1_ref, b1_ref, w2_ref, b2_ref, w3_ref, b3_ref, out_ref):
    """3-layer MLP forward for one batch tile, fully fused in VMEM (3 matmuls + bias + ReLU)."""
    x = x_ref[...]  # f32, unpadded feature width

    # layer 1: Linear + ReLU
    h1 = jnp.dot(x, w1_ref[...], preferred_element_type=jnp.float32) + b1_ref[...]
    h1 = jnp.maximum(h1, 0.0)

    # layer 2: Linear + ReLU
    h2 = jnp.dot(h1, w2_ref[...], preferred_element_type=jnp.float32) + b2_ref[...]
    h2 = jnp.maximum(h2, 0.0)

    # output layer: Linear (no output activation)
    y = jnp.dot(h2, w3_ref[...], preferred_element_type=jnp.float32) + b3_ref[...]
    out_ref[...] = y.astype(out_ref.dtype)


def _pick_batch_tile(batch_rounded):
    """Large tiles amortize the ~0.35us/step pipeline overhead; for big batches keep
    grid >= 2 so v7x's two TensorCores both get work (v5e/v6e: single TC, no effect)."""
    if batch_rounded <= 256:
        return batch_rounded                       # one step; launch overhead dominates anyway
    return min(1024, _round_up(pl.cdiv(batch_rounded, 2), SUBLANE))


def mlp_forward(x, padded_params, *, batch_tile=None):
    """Runs the fused MLP kernel. `padded_params` must come from pad_params (padded once)."""
    (w1, b1), (w2, b2), (w3, b3) = padded_params
    B, in_dim = x.shape
    h1_p, h2_p, out_dim = w1.shape[1], w2.shape[1], w3.shape[1]

    B_r = _round_up(B, SUBLANE)
    if batch_tile is None:
        batch_tile = _pick_batch_tile(B_r)
    B_p = _round_up(B_r, batch_tile)

    # Only the batch dim is zero-padded (cheap); features stay unpadded in HBM.
    # Padded rows produce garbage that is sliced off below, never stored over real rows.
    x_p = _pad_to(x, (B_p, in_dim))

    grid = (B_p // batch_tile,)

    flops = 2 * B_p * (in_dim * h1_p + h1_p * h2_p + h2_p * out_dim)
    bytes_accessed = 4 * (B_p * in_dim + B_p * out_dim
                          + in_dim * h1_p + h1_p * h2_p + h2_p * out_dim
                          + h1_p + h2_p + out_dim)

    y = pl.pallas_call(
        mlp_kernel,
        out_shape=jax.ShapeDtypeStruct((B_p, out_dim), x.dtype),
        grid=grid,
        in_specs=[
            # x tile: last dim == full array dim (in_dim), so no lane padding needed.
            pl.BlockSpec((batch_tile, in_dim), lambda i: (i, 0)),
            # Resident weights/biases (constant block index), pre-padded once at init.
            pl.BlockSpec((in_dim, h1_p), lambda i: (0, 0)),   # W1
            pl.BlockSpec((1, h1_p), lambda i: (0, 0)),        # b1
            pl.BlockSpec((h1_p, h2_p), lambda i: (0, 0)),     # W2
            pl.BlockSpec((1, h2_p), lambda i: (0, 0)),        # b2
            pl.BlockSpec((h2_p, out_dim), lambda i: (0, 0)),  # W3
            pl.BlockSpec((1, out_dim), lambda i: (0, 0)),     # b3
        ],
        # Output stored at its true width (last dim == full dim): no 64x write inflation,
        # no wrapper-side lane slice afterwards.
        out_specs=pl.BlockSpec((batch_tile, out_dim), lambda i: (i, 0)),
        compiler_params=pltpu.CompilerParams(
            dimension_semantics=("parallel",),
        ),
        cost_estimate=pl.CostEstimate(flops=flops, transcendentals=0,
                                      bytes_accessed=bytes_accessed),
    )(x_p, w1, b1, w2, b2, w3, b3)

    # strip batch padding only (features were never padded)
    return y if B_p == B else y[:B]


def xavier_uniform(key, fan_in, fan_out, dtype=jnp.float32):
    """Matches torch.nn.init.xavier_uniform_ (gain=1)."""
    bound = float(np.sqrt(6.0 / (fan_in + fan_out)))
    # stored as [in, out] so the kernel computes x @ W
    return jax.random.uniform(key, (fan_in, fan_out), dtype, -bound, bound)


def init_params(key, input_size, hidden_sizes, output_size):
    """Logical (unpadded) params, matching PyTorch defaults (xavier_uniform W, zero b)."""
    sizes = [input_size] + list(hidden_sizes) + [output_size]
    params = []
    for i in range(len(sizes) - 1):
        key, sub = jax.random.split(key)
        w = xavier_uniform(sub, sizes[i], sizes[i + 1])
        b = jnp.zeros((1, sizes[i + 1]), jnp.float32)  # 2D for TPU layout
        params.append((w, b))
    return params


def pad_params(params):
    """Pad HIDDEN feature dims to lane width ONCE, at init (hoisted out of the forward path).

    Exact for this MLP: padded weight rows/cols and biases are zero and ReLU(0)=0, so the
    padded hidden channels stay identically zero and never affect real outputs. The first
    layer's K (input features) and the last layer's N (output features) are left unpadded
    so x / y need no lane padding in HBM.
    """
    (w1, b1), (w2, b2), (w3, b3) = params
    in_dim, h1 = w1.shape
    _, h2 = w2.shape
    _, out_dim = w3.shape
    h1_p = _round_up(h1, LANE)
    h2_p = _round_up(h2, LANE)
    return (
        (_pad_to(w1, (in_dim, h1_p)), _pad_to(b1, (1, h1_p))),
        (_pad_to(w2, (h1_p, h2_p)), _pad_to(b2, (1, h2_p))),
        (_pad_to(w3, (h2_p, out_dim)), b3),
    )


def mlp_reference(x, params):
    """Pure-JAX reference (unpadded params) for correctness check."""
    (w1, b1), (w2, b2), (w3, b3) = params
    h1 = jnp.maximum(x @ w1 + b1, 0.0)
    h2 = jnp.maximum(h1 @ w2 + b2, 0.0)
    return h2 @ w3 + b3


if __name__ == "__main__":
    # Small shapes consistent with a DRL Q-network: input_size=4 (e.g. CartPole obs),
    # hidden_sizes=[32, 32], output_size=2 (actions).
    input_size, hidden_sizes, output_size = 4, [32, 32], 2
    batch = 16

    key = jax.random.PRNGKey(0)
    key, xkey = jax.random.split(key)
    params = init_params(key, input_size, hidden_sizes, output_size)
    padded_params = pad_params(params)           # padded once, reused by every forward
    x = jax.random.normal(xkey, (batch, input_size), jnp.float32)

    forward = jax.jit(mlp_forward)               # fold batch-pad + kernel into one program
    out = forward(x, padded_params)              # B=16 -> single grid step
    out = jax.block_until_ready(out)

    ref = mlp_reference(x, params)
    np.testing.assert_allclose(np.asarray(out), np.asarray(ref), rtol=1e-5, atol=1e-5)

    print("KERNEL_OK")
</pallas_src>

<mosaic_0001>
module attributes {stable_mosaic.version = 11 : i64} {
  func.func @mlp_kernel(%arg0: i32, %arg1: memref<16x4xf32, #tpu.memory_space<vmem>>, %arg2: memref<4x128xf32, #tpu.memory_space<vmem>>, %arg3: memref<1x128xf32, #tpu.memory_space<vmem>>, %arg4: memref<128x128xf32, #tpu.memory_space<vmem>>, %arg5: memref<1x128xf32, #tpu.memory_space<vmem>>, %arg6: memref<128x2xf32, #tpu.memory_space<vmem>>, %arg7: memref<1x2xf32, #tpu.memory_space<vmem>>, %arg8: memref<16x2xf32, #tpu.memory_space<vmem>>) attributes {dimension_semantics = [#tpu.dimension_semantics<parallel>], iteration_bounds = array<i64: 1>, scalar_prefetch = 0 : i64, scratch_operands = 0 : i64, tpu.core_type = #tpu.core_type<tc>, window_params = [{transform_indices = @transform_0, window_bounds = array<i64: 16, 4>}, {pipeline_mode = #tpu.pipeline_mode<synchronous>, transform_indices = @transform_1, window_bounds = array<i64: 4, 128>}, {pipeline_mode = #tpu.pipeline_mode<synchronous>, transform_indices = @transform_2, window_bounds = array<i64: 1, 128>}, {pipeline_mode = #tpu.pipeline_mode<synchronous>, transform_indices = @transform_3, window_bounds = array<i64: 128, 128>}, {pipeline_mode = #tpu.pipeline_mode<synchronous>, transform_indices = @transform_4, window_bounds = array<i64: 1, 128>}, {pipeline_mode = #tpu.pipeline_mode<synchronous>, transform_indices = @transform_5, window_bounds = array<i64: 128, 2>}, {pipeline_mode = #tpu.pipeline_mode<synchronous>, transform_indices = @transform_6, window_bounds = array<i64: 1, 2>}, {transform_indices = @transform_7, window_bounds = array<i64: 16, 2>}]} {
    %c0 = arith.constant 0 : index
    %c0_0 = arith.constant 0 : index
    %0 = vector.load %arg1[%c0, %c0_0] : memref<16x4xf32, #tpu.memory_space<vmem>>, vector<16x4xf32>
    %c0_1 = arith.constant 0 : index
    %c0_2 = arith.constant 0 : index
    %1 = vector.load %arg2[%c0_1, %c0_2] : memref<4x128xf32, #tpu.memory_space<vmem>>, vector<4x128xf32>
    %cst = arith.constant dense<0.000000e+00> : vector<16x128xf32>
    %2 = tpu.matmul %0, %1, %cst {dimension_numbers = #tpu.dot_dimension_numbers<[1], [0], [0], [1], [0, 0, 1, 1], [], []>} : vector<16x4xf32>, vector<4x128xf32>, vector<16x128xf32> -> vector<16x128xf32>
    %c0_3 = arith.constant 0 : index
    %c0_4 = arith.constant 0 : index
    %3 = vector.load %arg3[%c0_3, %c0_4] : memref<1x128xf32, #tpu.memory_space<vmem>>, vector<1x128xf32>
    %4 = vector.broadcast %3 : vector<1x128xf32> to vector<16x128xf32>
    %5 = arith.addf %2, %4 : vector<16x128xf32>
    %cst_5 = arith.constant 0.000000e+00 : f32
    %6 = vector.broadcast %cst_5 : f32 to vector<16x128xf32>
    %7 = arith.maximumf %5, %6 : vector<16x128xf32>
    %c0_6 = arith.constant 0 : index
    %c0_7 = arith.constant 0 : index
    %8 = vector.load %arg4[%c0_6, %c0_7] : memref<128x128xf32, #tpu.memory_space<vmem>>, vector<128x128xf32>
    %cst_8 = arith.constant dense<0.000000e+00> : vector<16x128xf32>
    %9 = tpu.matmul %7, %8, %cst_8 {dimension_numbers = #tpu.dot_dimension_numbers<[1], [0], [0], [1], [0, 0, 1, 1], [], []>} : vector<16x128xf32>, vector<128x128xf32>, vector<16x128xf32> -> vector<16x128xf32>
    %c0_9 = arith.constant 0 : index
    %c0_10 = arith.constant 0 : index
    %10 = vector.load %arg5[%c0_9, %c0_10] : memref<1x128xf32, #tpu.memory_space<vmem>>, vector<1x128xf32>
    %11 = vector.broadcast %10 : vector<1x128xf32> to vector<16x128xf32>
    %12 = arith.addf %9, %11 : vector<16x128xf32>
    %cst_11 = arith.constant 0.000000e+00 : f32
    %13 = vector.broadcast %cst_11 : f32 to vector<16x128xf32>
    %14 = arith.maximumf %12, %13 : vector<16x128xf32>
    %c0_12 = arith.constant 0 : index
    %c0_13 = arith.constant 0 : index
    %15 = vector.load %arg6[%c0_12, %c0_13] : memref<128x2xf32, #tpu.memory_space<vmem>>, vector<128x2xf32>
    %cst_14 = arith.constant dense<0.000000e+00> : vector<16x2xf32>
    %16 = tpu.matmul %14, %15, %cst_14 {dimension_numbers = #tpu.dot_dimension_numbers<[1], [0], [0], [1], [0, 0, 1, 1], [], []>} : vector<16x128xf32>, vector<128x2xf32>, vector<16x2xf32> -> vector<16x2xf32>
    %c0_15 = arith.constant 0 : index
    %c0_16 = arith.constant 0 : index
    %17 = vector.load %arg7[%c0_15, %c0_16] : memref<1x2xf32, #tpu.memory_space<vmem>>, vector<1x2xf32>
    %18 = vector.broadcast %17 : vector<1x2xf32> to vector<16x2xf32>
    %19 = arith.addf %16, %18 : vector<16x2xf32>
    %c0_17 = arith.constant 0 : index
    %c0_18 = arith.constant 0 : index
    %20 = vector.load %arg8[%c0_17, %c0_18] : memref<16x2xf32, #tpu.memory_space<vmem>>, vector<16x2xf32>
    tpu.vector_store %arg8[%c0_17, %c0_18], %19 {strides = array<i32>} : memref<16x2xf32, #tpu.memory_space<vmem>>, vector<16x2xf32>,
    return
  }
  func.func @transform_0(%arg0: i32) -> (i32, i32) {
    %c0_i32 = arith.constant 0 : i32
    %c0_i32_0 = arith.constant 0 : i32
    return %arg0, %c0_i32 : i32, i32
  }
  func.func @transform_1(%arg0: i32) -> (i32, i32) {
    %c0_i32 = arith.constant 0 : i32
    %c0_i32_0 = arith.constant 0 : i32
    %c0_i32_1 = arith.constant 0 : i32
    return %c0_i32, %c0_i32_0 : i32, i32
  }
  func.func @transform_2(%arg0: i32) -> (i32, i32) {
    %c0_i32 = arith.constant 0 : i32
    %c0_i32_0 = arith.constant 0 : i32
    %c0_i32_1 = arith.constant 0 : i32
    return %c0_i32, %c0_i32_0 : i32, i32
  }
  func.func @transform_3(%arg0: i32) -> (i32, i32) {
    %c0_i32 = arith.constant 0 : i32
    %c0_i32_0 = arith.constant 0 : i32
    %c0_i32_1 = arith.constant 0 : i32
    return %c0_i32, %c0_i32_0 : i32, i32
  }
  func.func @transform_4(%arg0: i32) -> (i32, i32) {
    %c0_i32 = arith.constant 0 : i32
    %c0_i32_0 = arith.constant 0 : i32
    %c0_i32_1 = arith.constant 0 : i32
    return %c0_i32, %c0_i32_0 : i32, i32
  }
  func.func @transform_5(%arg0: i32) -> (i32, i32) {
    %c0_i32 = arith.constant 0 : i32
    %c0_i32_0 = arith.constant 0 : i32
    %c0_i32_1 = arith.constant 0 : i32
    return %c0_i32, %c0_i32_0 : i32, i32
  }
  func.func @transform_6(%arg0: i32) -> (i32, i32) {
    %c0_i32 = arith.constant 0 : i32
    %c0_i32_0 = arith.constant 0 : i32
    %c0_i32_1 = arith.constant 0 : i32
    return %c0_i32, %c0_i32_0 : i32, i32
  }
  func.func @transform_7(%arg0: i32) -> (i32, i32) {
    %c0_i32 = arith.constant 0 : i32
    %c0_i32_0 = arith.constant 0 : i32
    return %arg0, %c0_i32 : i32, i32
  }
}

</mosaic_0001>

<bundles_post_ra>
// kernel: mlp_forward.1
= control target key start
LH: loop header
LB: loop body
LE: loop exit
PB: predicated region body
PF: predicated region fallthrough
CT: control target
= control target key end

     0   :  { %vm43_vm0 = vcmask 1043456   ;;  %vm36_vm1 = vcmask 31744   ;;  %vm322_vm2 = vcmask 15360   ;;  %s609_s1 = inlined_call_operand.vmem [shape: f32[4,128], index: 1, kind: input, shape index: {}]   ;;  %s610_s0 = inlined_call_operand.vmem [shape: f32[16,4], index: 0, kind: input, shape index: {}]   ;;  %s611_s3 = inlined_call_operand.vmem [shape: f32[128,128], index: 3, kind: input, shape index: {}]   ;;  %s612_s5 = inlined_call_operand.vmem [shape: f32[128,2], index: 5, kind: input, shape index: {}]   ;;  %s613_s2 = inlined_call_operand.vmem [shape: f32[1,128], index: 2, kind: input, shape index: {}]   ;;  %s614_s4 = inlined_call_operand.vmem [shape: f32[1,128], index: 4, kind: input, shape index: {}]   ;;  %s615_s6 = inlined_call_operand.vmem [shape: f32[1,2], index: 6, kind: input, shape index: {}]   ;;  %s616_s7 = inlined_call_operand.vmem [shape: f32[16,2], index: 7, kind: output, shape index: {}]  }
   0x1   :  { %v28_v0 = vld [vmem:[%s609_s1] sm:$0xf]  ;;  %v27_v2 = vld [vmem:[%s610_s0 + $0x8] sm:$0xff]  ;;  %v139_v3 = vld [vmem:[%s611_s3 + $0x78] sm:$0xff] }
   0x2   :  { %v26_v1 = vld [vmem:[%s610_s0] sm:$0xff]  ;;  %374 = vmatprep.subr.msk.mxu0 %vm43_vm0, %v28_v0  ;;  %v138_v4 = vld [vmem:[%s611_s3 + $0x70] sm:$0xff]  ;;  %379 = vmatprep.subr.mxu1 %v139_v3  ;;  %v137_v5 = vld [vmem:[%s611_s3 + $0x68] sm:$0xff] }
   0x3   :  { %376 = vmatprep.mubr.msk.f32.mxu0 %vm36_vm1, %v26_v1  ;;  %375 = vmatpush3.msk.msra.mxu0 %vm43_vm0, %v28_v0  ;;  %v136_v6 = vld [vmem:[%s611_s3 + $0x60] sm:$0xff]  ;;  %v135_v7 = vld [vmem:[%s611_s3 + $0x58] sm:$0xff]  ;;  %v134_v8 = vld [vmem:[%s611_s3 + $0x50] sm:$0xff] }
   0x4   :  { %377 = vmatmul.mubr.msk.f32.vlgmr.msra.gmra.mxu0 %vm36_vm1, %v27_v2  ;;  %380 = vmatpush3.msra.mxu1 %v139_v3  ;;  %v133_v9 = vld [vmem:[%s611_s3 + $0x48] sm:$0xff]  ;;  %v132_v10 = vld [vmem:[%s611_s3 + $0x40] sm:$0xff]  ;;  %v131_v11 = vld [vmem:[%s611_s3 + $0x38] sm:$0xff] }
   0x5   :  { %381 = vmatprep.subr.mxu1 %v138_v4  ;;  %v130_v12 = vld [vmem:[%s611_s3 + $0x30] sm:$0xff]  ;;  %v129_v13 = vld [vmem:[%s611_s3 + $0x28] sm:$0xff]  ;;  %v128_v14 = vld [vmem:[%s611_s3 + $0x20] sm:$0xff] }
   0x6   :  { %382 = vmatpush3.msra.mxu1 %v138_v4  ;;  %v127_v15 = vld [vmem:[%s611_s3 + $0x18] sm:$0xff]  ;;  %v126_v16 = vld [vmem:[%s611_s3 + $0x10] sm:$0xff]  ;;  %v125_v17 = vld [vmem:[%s611_s3 + $0x8] sm:$0xff] }
   0x7   :  { %383 = vmatprep.subr.mxu1 %v137_v5  ;;  %v124_v18 = vld [vmem:[%s611_s3] sm:$0xff]  ;;  %v239_v19 = vld [vmem:[%s612_s5 + $0x78] sm:$0xff]  ;;  %v238_v20 = vld [vmem:[%s612_s5 + $0x70] sm:$0xff] }
   0x8   :  { %384 = vmatpush3.msra.mxu1 %v137_v5  ;;  %414 = vmatprep.subr.mxu0 %v239_v19  ;;  %v237_v21 = vld [vmem:[%s612_s5 + $0x68] sm:$0xff]  ;;  %v236_v22 = vld [vmem:[%s612_s5 + $0x60] sm:$0xff]  ;;  %v235_v23 = vld [vmem:[%s612_s5 + $0x58] sm:$0xff] }
   0x9   :  { %385 = vmatprep.subr.mxu1 %v136_v6  ;;  %415 = vmatpush3.msra.mxu0 %v239_v19  ;;  %v234_v24 = vld [vmem:[%s612_s5 + $0x50] sm:$0xff]  ;;  %v233_v25 = vld [vmem:[%s612_s5 + $0x48] sm:$0xff]  ;;  %v232_v26 = vld [vmem:[%s612_s5 + $0x40] sm:$0xff] }
   0xa   :  { %386 = vmatpush3.msra.mxu1 %v136_v6  ;;  %416 = vmatprep.subr.mxu0 %v238_v20  ;;  %v231_v27 = vld [vmem:[%s612_s5 + $0x38] sm:$0xff]  ;;  %v230_v28 = vld [vmem:[%s612_s5 + $0x30] sm:$0xff]  ;;  %v229_v29 = vld [vmem:[%s612_s5 + $0x28] sm:$0xff] }
   0xb   :  { %387 = vmatprep.subr.mxu1 %v135_v7  ;;  %417 = vmatpush3.msra.mxu0 %v238_v20  ;;  %v228_v30 = vld [vmem:[%s612_s5 + $0x20] sm:$0xff]  ;;  %v227_v38 = vld [vmem:[%s612_s5 + $0x18] sm:$0xff]  ;;  %v226_v39 = vld [vmem:[%s612_s5 + $0x10] sm:$0xff] }
   0xc   :  { %388 = vmatpush3.msra.mxu1 %v135_v7  ;;  %418 = vmatprep.subr.mxu0 %v237_v21  ;;  %v329_v31 = vld [vmem:[%s613_s2] ss:$0 sm:$0xff]  ;;  %v225_v40 = vld [vmem:[%s612_s5 + $0x8] sm:$0xff] }
   0xd   :  { %389 = vmatprep.subr.mxu1 %v134_v8  ;;  %419 = vmatpush3.msra.mxu0 %v237_v21  ;;  %v224_v41 = vld [vmem:[%s612_s5] sm:$0xff] }
   0xe   :  { %390 = vmatpush3.msra.mxu1 %v134_v8  ;;  %420 = vmatprep.subr.mxu0 %v236_v22  ;;  %v333_v42 = vld [vmem:[%s614_s4] ss:$0 sm:$0xff] }
   0xf   :  { %391 = vmatprep.subr.mxu1 %v133_v9  ;;  %421 = vmatpush3.msra.mxu0 %v236_v22  ;;  %v334_v49 = vld [vmem:[%s615_s6] ss:$0 sm:$0xff] }
  0x10   :  { %392 = vmatpush3.msra.mxu1 %v133_v9  ;;  %422 = vmatprep.subr.mxu0 %v235_v23 }
  0x11   :  { %393 = vmatprep.subr.mxu1 %v132_v10  ;;  %423 = vmatpush3.msra.mxu0 %v235_v23 }
  0x12   :  { %394 = vmatpush3.msra.mxu1 %v132_v10  ;;  %424 = vmatprep.subr.mxu0 %v234_v24 }
  0x13   :  { %395 = vmatprep.subr.mxu1 %v131_v11  ;;  %425 = vmatpush3.msra.mxu0 %v234_v24 }
  0x14   :  { %396 = vmatpush3.msra.mxu1 %v131_v11  ;;  %426 = vmatprep.subr.mxu0 %v233_v25 }
  0x15   :  { %397 = vmatprep.subr.mxu1 %v130_v12  ;;  %427 = vmatpush3.msra.mxu0 %v233_v25 }
  0x16   :  { %398 = vmatpush3.msra.mxu1 %v130_v12  ;;  %428 = vmatprep.subr.mxu0 %v232_v26 }
  0x17   :  { %399 = vmatprep.subr.mxu1 %v129_v13  ;;  %429 = vmatpush3.msra.mxu0 %v232_v26 }
  0x18   :  { %400 = vmatpush3.msra.mxu1 %v129_v13  ;;  %430 = vmatprep.subr.mxu0 %v231_v27 }
  0x19   :  { %401 = vmatprep.subr.mxu1 %v128_v14  ;;  %431 = vmatpush3.msra.mxu0 %v231_v27 }
  0x1a   :  { %402 = vmatpush3.msra.mxu1 %v128_v14  ;;  %432 = vmatprep.subr.mxu0 %v230_v28 }
  0x1b   :  { %403 = vmatprep.subr.mxu1 %v127_v15  ;;  %433 = vmatpush3.msra.mxu0 %v230_v28 }
  0x1c   :  { %404 = vmatpush3.msra.mxu1 %v127_v15  ;;  %434 = vmatprep.subr.mxu0 %v229_v29 }
  0x1d   :  { %405 = vmatprep.subr.mxu1 %v126_v16  ;;  %435 = vmatpush3.msra.mxu0 %v229_v29 }
  0x1e   :  { %406 = vmatpush3.msra.mxu1 %v126_v16  ;;  %436 = vmatprep.subr.mxu0 %v228_v30 }
  0x1f   :  { %407 = vmatprep.subr.mxu1 %v125_v17  ;;  %437 = vmatpush3.msra.mxu0 %v228_v30 }
  0x20   :  { %408 = vmatpush3.msra.mxu1 %v125_v17  ;;  %438 = vmatprep.subr.mxu0 %v227_v38 }
  0x21   :  { %409 = vmatprep.subr.mxu1 %v124_v18  ;;  %439 = vmatpush3.msra.mxu0 %v227_v38 }
  0x22   :  { %410 = vmatpush3.msra.mxu1 %v124_v18  ;;  %440 = vmatprep.subr.mxu0 %v226_v39 }
  0x23   :  { %441 = vmatpush3.msra.mxu0 %v226_v39 }
  0x24   :  { %442 = vmatprep.subr.mxu0 %v225_v40 }
  0x25   :  { %443 = vmatpush3.msra.mxu0 %v225_v40 }
  0x26   :  { %444 = vmatprep.subr.mxu0 %v224_v41 }
  0x27   :  { %445 = vmatpush3.msra.mxu0 %v224_v41 }
  0xc4   :  { %v378_v32 = vpop.f32.mrf.mxu0 }
  0xc5   :  { %v119_v33 = vadd.f32 %v378_v32, %v329_v31 }
  0xc6   :  { %v113_v34 = vpop.f32.mrf.mxu0 }
  0xc7   :  { %v114_v35 = vadd.f32 %v329_v31, %v113_v34  ;;  %v123_v37 = vmax.f32 %v119_v33, 0.0 }
  0xc9   :  { %v122_v36 = vmax.f32 %v114_v35, 0.0 }
  0xcb   :  { %411 = vmatprep.mubr.f32.mxu1 %v122_v36 }
  0xcc   :  { %412 = vmatmul.mubr.f32.vlgmr.msra.gmra.mxu1 %v123_v37 }
 0x18c   :  { %v413_v43 = vpop.f32.mrf.mxu1 }
 0x18d   :  { %v219_v44 = vadd.f32 %v413_v43, %v333_v42 }
 0x18e   :  { %v213_v45 = vpop.f32.mrf.mxu1 }
 0x18f   :  { %v214_v46 = vadd.f32 %v333_v42, %v213_v45  ;;  %v223_v48 = vmax.f32 %v219_v44, 0.0 }
 0x191   :  { %v222_v47 = vmax.f32 %v214_v46, 0.0 }
 0x193   :  { %446 = vmatprep.mubr.f32.mxu0 %v222_v47 }
 0x194   :  { %447 = vmatmul.mubr.f32.vlgmr.msra.gmra.mxu0 %v223_v48 }
 0x254   :  { %v448_v50 = vpop.f32.mrf.mxu0 }
 0x255   :  { %v319_v51 = vadd.f32 %v448_v50, %v334_v49 }
 0x256   :  { %v313_v52 = vpop.f32.mrf.mxu0 }
 0x257   :  { %324 = vst.msk [vmem:[%s616_s7 + $0x8] sm:$0xff] %vm322_vm2, %v319_v51  ;;  %v314_v53 = vadd.f32 %v334_v49, %v313_v52 }
 0x259   :  { %323 = vst.msk [vmem:[%s616_s7] sm:$0xff] %vm322_vm2, %v314_v53 }

</bundles_post_ra>
